<compile_context>
chip_gen: v5e
topology: v5e:2x2
jax: 0.10.0
libtpu: 0.0.40
codegen_flags: <defaults>
</compile_context>

<pallas_src>
import math

import jax
import jax.numpy as jnp
from jax import lax
from jax.experimental import pallas as pl
from jax.experimental.pallas import tpu as pltpu

_TWO_PI = float(2.0 * math.pi)
_INV_2_24 = float(1.0 / (1 << 24))


def _i32(v):
    """Python int -> int32 constant with uint32 two's-complement wrapping."""
    v &= 0xFFFFFFFF
    if v >= (1 << 31):
        v -= 1 << 32
    return jnp.int32(v)


def _lsr(x, k):
    """Logical shift-right for int32 (arithmetic shift + mask off sign extension)."""
    return (x >> k) & _i32((1 << (32 - k)) - 1)


def _mix32(x):
    """lowbias32 avalanche hash (Wellons), in wrapping int32 arithmetic (== uint32)."""
    x = x ^ _lsr(x, 16)
    x = x * _i32(0x7FEB352D)
    x = x ^ _lsr(x, 15)
    x = x * _i32(0x846CA68B)
    x = x ^ _lsr(x, 16)
    return x


def _std_normal_tile(row0, tb, x_dim, seed):
    """eps ~ N(0,1), shape (tb, x_dim).

    Counter-based: counters depend on the GLOBAL row index, so the draw does not
    depend on the batch tiling. Box-Muller with the cos/sin halves split along the
    sublane (batch) axis -> all transcendental work is on full-lane-width vregs.
    """
    half = tb // 2                                                   # tb is a multiple of 8
    rows = lax.broadcasted_iota(jnp.int32, (half, x_dim), 0) + row0
    cols = lax.broadcasted_iota(jnp.int32, (half, x_dim), 1)
    ctr = rows * _i32(x_dim) + cols                                  # unique per (pair, col)
    k = ctr ^ (seed * _i32(0x9E3779B9))
    b1 = _mix32(k * _i32(0x9E3779B1) + _i32(1))
    b2 = _mix32(k * _i32(0x85EBCA77) + _i32(0x165667B1))
    # Top 24 bits -> uniforms; u1 in (0, 1] keeps log finite, u2 in [0, 1).
    u1 = (_lsr(b1, 8).astype(jnp.float32) + jnp.float32(1.0)) * jnp.float32(_INV_2_24)
    u2 = _lsr(b2, 8).astype(jnp.float32) * jnp.float32(_INV_2_24)
    r = jnp.sqrt(jnp.float32(-2.0) * jnp.log(u1))
    theta = jnp.float32(_TWO_PI) * u2
    # Sublane-aligned join: cos half -> rows [0, tb/2), sin half -> rows [tb/2, tb).
    return jnp.concatenate([r * jnp.cos(theta), r * jnp.sin(theta)], axis=0)


def decoder_kernel(seed_ref, x_ref, wt_ref, gamma_ref, o_ref):
    tb, x_dim = o_ref.shape
    # MXU: lane-dense (tb, K) @ (K, x_dim) in bf16, accumulate in f32.
    z = jnp.dot(
        x_ref[...].astype(jnp.bfloat16),
        wt_ref[...],
        preferred_element_type=jnp.float32,
    )
    row0 = pl.program_id(0) * tb
    eps = _std_normal_tile(row0, tb, x_dim, seed_ref[0])
    # Reparameterize: z + eps * gamma (gamma is a scalar from SMEM).
    o_ref[...] = (z + eps * gamma_ref[0]).astype(o_ref.dtype)


def _pick_batch_tile(batch, z_dim, x_dim):
    """Largest multiple-of-8 row tile that fits a conservative VMEM budget,
    capped so batch > 8 always gets >= 2 grid steps (v7x megacore)."""
    vmem_budget = 24 * 1024 * 1024                 # fits default scoped VMEM on v5e/v6e/v7x
    weight_bytes = 2 * 2 * z_dim * x_dim           # bf16 weight, double-buffered worst case
    per_row = 8 * z_dim + 24 * x_dim               # f32 in/out tiles (x2 buf) + f32 temporaries
    tb = max(8, min(512, (vmem_budget - weight_bytes) // per_row))
    if batch > 8:
        half_b = ((batch + 1) // 2 + 7) // 8 * 8   # ~ceil(B/2) rounded up to 8
        tb = min(tb, half_b)
    tb = min(tb, (batch + 7) // 8 * 8)             # never pad beyond one tile
    tb = max(8, (tb // 8) * 8)
    return int(tb)


def decoder_forward(x, What, gamma, seed=0):
    """x: (B, z_dim) f32, What: (x_dim, z_dim) f32 (nn.Linear layout), gamma: scalar."""
    x = jnp.asarray(x, jnp.float32)
    w = jnp.asarray(What, jnp.float32)
    B, z_dim = x.shape
    x_dim = w.shape[0]

    # One-time lane-dense weight: (z_dim, x_dim) bf16 feeds the MXU as plain (M,K)x(K,N).
    wt = w.T.astype(jnp.bfloat16)

    tb = _pick_batch_tile(B, z_dim, x_dim)
    Bp = ((B + tb - 1) // tb) * tb
    xp = jnp.pad(x, ((0, Bp - B), (0, 0))) if Bp != B else x
    grid = (Bp // tb,)

    seed_arr = jnp.asarray([seed], dtype=jnp.int32)
    gamma_arr = jnp.reshape(jnp.asarray(gamma, jnp.float32), (1,))

    cost = pl.CostEstimate(
        flops=2 * Bp * z_dim * x_dim,
        transcendentals=2 * Bp * x_dim,            # log/sqrt/cos/sin amortized over pairs
        bytes_accessed=4 * (Bp * z_dim + Bp * x_dim) + 2 * z_dim * x_dim,
    )

    out = pl.pallas_call(
        decoder_kernel,
        out_shape=jax.ShapeDtypeStruct((Bp, x_dim), jnp.float32),
        grid_spec=pltpu.PrefetchScalarGridSpec(
            num_scalar_prefetch=1,                                     # seed lands in SMEM
            grid=grid,
            in_specs=[
                pl.BlockSpec((tb, z_dim), lambda i, s: (i, 0)),        # x row tile
                pl.BlockSpec((z_dim, x_dim), lambda i, s: (0, 0)),     # full weight, resident
                pl.BlockSpec(memory_space=pltpu.MemorySpace.SMEM),     # gamma scalar
            ],
            out_specs=pl.BlockSpec((tb, x_dim), lambda i, s: (i, 0)),
        ),
        compiler_params=pltpu.CompilerParams(
            dimension_semantics=("parallel",),     # batch tiles independent -> v7x megacore
            vmem_limit_bytes=32 * 1024 * 1024,
        ),
        cost_estimate=cost,
    )(seed_arr, xp, wt, gamma_arr)

    return out[:B] if Bp != B else out


if __name__ == "__main__":
    # Small shapes consistent with the module: Decoder(x_dim=128, z_dim=32), batch=8.
    B, z_dim, x_dim = 8, 32, 128

    key = jax.random.PRNGKey(0)
    kx, kw = jax.random.split(key, 2)

    x = jax.random.normal(kx, (B, z_dim), dtype=jnp.float32)
    # Deterministic "parameter": What plays the role of a Linear(z_dim, x_dim) weight.
    What = jax.random.normal(kw, (x_dim, z_dim), dtype=jnp.float32) * 0.1
    gamma = jnp.float32(0.05)  # noise scale

    out = decoder_forward(x, What, gamma, seed=0)
    out = jax.block_until_ready(out)

    # Sanity: output must equal the deterministic part up to gamma-scaled Gaussian noise
    # (plus tiny bf16 matmul rounding, which is swamped by the additive noise).
    z_mean = x @ What.T
    assert out.shape == (B, x_dim)
    assert bool(jnp.all(jnp.isfinite(out)))
    noise = out - z_mean
    assert float(jnp.max(jnp.abs(noise))) < 10.0 * float(gamma)
    nstd = float(jnp.std(noise))
    assert 0.3 * float(gamma) < nstd < 3.0 * float(gamma)

    print("KERNEL_OK")
</pallas_src>

<mosaic_0001>
module attributes {stable_mosaic.version = 11 : i64} {
  func.func @decoder_kernel(%arg0: i32, %arg1: memref<1xi32, #tpu.memory_space<smem>>, %arg2: memref<8x32xf32, #tpu.memory_space<vmem>>, %arg3: memref<32x128xbf16, #tpu.memory_space<vmem>>, %arg4: memref<1xf32, #tpu.memory_space<smem>>, %arg5: memref<8x128xf32, #tpu.memory_space<vmem>>) attributes {dimension_semantics = [#tpu.dimension_semantics<parallel>], iteration_bounds = array<i64: 1>, scalar_prefetch = 1 : i64, scratch_operands = 0 : i64, tpu.core_type = #tpu.core_type<tc>, window_params = [{transform_indices = @transform_0, window_bounds = array<i64: 8, 32>}, {pipeline_mode = #tpu.pipeline_mode<synchronous>, transform_indices = @transform_1, window_bounds = array<i64: 32, 128>}, {transform_indices = @transform_2, window_bounds = array<i64: 1>}, {transform_indices = @transform_3, window_bounds = array<i64: 8, 128>}]} {
    %c0 = arith.constant 0 : index
    %c0_0 = arith.constant 0 : index
    %0 = vector.load %arg2[%c0, %c0_0] : memref<8x32xf32, #tpu.memory_space<vmem>>, vector<8x32xf32>
    %1 = arith.truncf %0 : vector<8x32xf32> to vector<8x32xbf16>
    %c0_1 = arith.constant 0 : index
    %c0_2 = arith.constant 0 : index
    %2 = vector.load %arg3[%c0_1, %c0_2] : memref<32x128xbf16, #tpu.memory_space<vmem>>, vector<32x128xbf16>
    %cst = arith.constant dense<0.000000e+00> : vector<8x128xf32>
    %3 = tpu.matmul %1, %2, %cst {dimension_numbers = #tpu.dot_dimension_numbers<[1], [0], [0], [1], [0, 0, 1, 1], [], []>} : vector<8x32xbf16>, vector<32x128xbf16>, vector<8x128xf32> -> vector<8x128xf32>
    %c8_i32 = arith.constant 8 : i32
    %4 = arith.muli %arg0, %c8_i32 : i32
    %c0_3 = arith.constant 0 : index
    %5 = memref.load %arg1[%c0_3] : memref<1xi32, #tpu.memory_space<smem>>
    %6 = tpu.iota {dimensions = array<i32: 0>} : vector<4x128xi32>
    %7 = vector.broadcast %4 : i32 to vector<4x128xi32>
    %8 = arith.addi %6, %7 : vector<4x128xi32>
    %9 = tpu.iota {dimensions = array<i32: 1>} : vector<4x128xi32>
    %c128_i32 = arith.constant 128 : i32
    %10 = vector.broadcast %c128_i32 : i32 to vector<4x128xi32>
    %11 = arith.muli %8, %10 : vector<4x128xi32>
    %12 = arith.addi %11, %9 : vector<4x128xi32>
    %c-1640531527_i32 = arith.constant -1640531527 : i32
    %13 = arith.muli %5, %c-1640531527_i32 : i32
    %14 = vector.broadcast %13 : i32 to vector<4x128xi32>
    %15 = arith.xori %12, %14 : vector<4x128xi32>
    %c-1640531535_i32 = arith.constant -1640531535 : i32
    %16 = vector.broadcast %c-1640531535_i32 : i32 to vector<4x128xi32>
    %17 = arith.muli %15, %16 : vector<4x128xi32>
    %c1_i32 = arith.constant 1 : i32
    %18 = vector.broadcast %c1_i32 : i32 to vector<4x128xi32>
    %19 = arith.addi %17, %18 : vector<4x128xi32>
    %c16_i32 = arith.constant 16 : i32
    %20 = vector.broadcast %c16_i32 : i32 to vector<4x128xi32>
    %21 = arith.shrsi %19, %20 : vector<4x128xi32>
    %c65535_i32 = arith.constant 65535 : i32
    %22 = vector.broadcast %c65535_i32 : i32 to vector<4x128xi32>
    %23 = arith.andi %21, %22 : vector<4x128xi32>
    %24 = arith.xori %19, %23 : vector<4x128xi32>
    %c2146121005_i32 = arith.constant 2146121005 : i32
    %25 = vector.broadcast %c2146121005_i32 : i32 to vector<4x128xi32>
    %26 = arith.muli %24, %25 : vector<4x128xi32>
    %c15_i32 = arith.constant 15 : i32
    %27 = vector.broadcast %c15_i32 : i32 to vector<4x128xi32>
    %28 = arith.shrsi %26, %27 : vector<4x128xi32>
    %c131071_i32 = arith.constant 131071 : i32
    %29 = vector.broadcast %c131071_i32 : i32 to vector<4x128xi32>
    %30 = arith.andi %28, %29 : vector<4x128xi32>
    %31 = arith.xori %26, %30 : vector<4x128xi32>
    %c-2073254261_i32 = arith.constant -2073254261 : i32
    %32 = vector.broadcast %c-2073254261_i32 : i32 to vector<4x128xi32>
    %33 = arith.muli %31, %32 : vector<4x128xi32>
    %c16_i32_4 = arith.constant 16 : i32
    %34 = vector.broadcast %c16_i32_4 : i32 to vector<4x128xi32>
    %35 = arith.shrsi %33, %34 : vector<4x128xi32>
    %c65535_i32_5 = arith.constant 65535 : i32
    %36 = vector.broadcast %c65535_i32_5 : i32 to vector<4x128xi32>
    %37 = arith.andi %35, %36 : vector<4x128xi32>
    %38 = arith.xori %33, %37 : vector<4x128xi32>
    %c-2048144777_i32 = arith.constant -2048144777 : i32
    %39 = vector.broadcast %c-2048144777_i32 : i32 to vector<4x128xi32>
    %40 = arith.muli %15, %39 : vector<4x128xi32>
    %c374761393_i32 = arith.constant 374761393 : i32
    %41 = vector.broadcast %c374761393_i32 : i32 to vector<4x128xi32>
    %42 = arith.addi %40, %41 : vector<4x128xi32>
    %c16_i32_6 = arith.constant 16 : i32
    %43 = vector.broadcast %c16_i32_6 : i32 to vector<4x128xi32>
    %44 = arith.shrsi %42, %43 : vector<4x128xi32>
    %c65535_i32_7 = arith.constant 65535 : i32
    %45 = vector.broadcast %c65535_i32_7 : i32 to vector<4x128xi32>
    %46 = arith.andi %44, %45 : vector<4x128xi32>
    %47 = arith.xori %42, %46 : vector<4x128xi32>
    %c2146121005_i32_8 = arith.constant 2146121005 : i32
    %48 = vector.broadcast %c2146121005_i32_8 : i32 to vector<4x128xi32>
    %49 = arith.muli %47, %48 : vector<4x128xi32>
    %c15_i32_9 = arith.constant 15 : i32
    %50 = vector.broadcast %c15_i32_9 : i32 to vector<4x128xi32>
    %51 = arith.shrsi %49, %50 : vector<4x128xi32>
    %c131071_i32_10 = arith.constant 131071 : i32
    %52 = vector.broadcast %c131071_i32_10 : i32 to vector<4x128xi32>
    %53 = arith.andi %51, %52 : vector<4x128xi32>
    %54 = arith.xori %49, %53 : vector<4x128xi32>
    %c-2073254261_i32_11 = arith.constant -2073254261 : i32
    %55 = vector.broadcast %c-2073254261_i32_11 : i32 to vector<4x128xi32>
    %56 = arith.muli %54, %55 : vector<4x128xi32>
    %c16_i32_12 = arith.constant 16 : i32
    %57 = vector.broadcast %c16_i32_12 : i32 to vector<4x128xi32>
    %58 = arith.shrsi %56, %57 : vector<4x128xi32>
    %c65535_i32_13 = arith.constant 65535 : i32
    %59 = vector.broadcast %c65535_i32_13 : i32 to vector<4x128xi32>
    %60 = arith.andi %58, %59 : vector<4x128xi32>
    %61 = arith.xori %56, %60 : vector<4x128xi32>
    %c8_i32_14 = arith.constant 8 : i32
    %62 = vector.broadcast %c8_i32_14 : i32 to vector<4x128xi32>
    %63 = arith.shrsi %38, %62 : vector<4x128xi32>
    %c16777215_i32 = arith.constant 16777215 : i32
    %64 = vector.broadcast %c16777215_i32 : i32 to vector<4x128xi32>
    %65 = arith.andi %63, %64 : vector<4x128xi32>
    %66 = arith.sitofp %65 : vector<4x128xi32> to vector<4x128xf32>
    %cst_15 = arith.constant 1.000000e+00 : f32
    %67 = vector.broadcast %cst_15 : f32 to vector<4x128xf32>
    %68 = arith.addf %66, %67 : vector<4x128xf32>
    %cst_16 = arith.constant 5.96046448E-8 : f32
    %69 = vector.broadcast %cst_16 : f32 to vector<4x128xf32>
    %70 = arith.mulf %68, %69 : vector<4x128xf32>
    %c8_i32_17 = arith.constant 8 : i32
    %71 = vector.broadcast %c8_i32_17 : i32 to vector<4x128xi32>
    %72 = arith.shrsi %61, %71 : vector<4x128xi32>
    %c16777215_i32_18 = arith.constant 16777215 : i32
    %73 = vector.broadcast %c16777215_i32_18 : i32 to vector<4x128xi32>
    %74 = arith.andi %72, %73 : vector<4x128xi32>
    %75 = arith.sitofp %74 : vector<4x128xi32> to vector<4x128xf32>
    %cst_19 = arith.constant 5.96046448E-8 : f32
    %76 = vector.broadcast %cst_19 : f32 to vector<4x128xf32>
    %77 = arith.mulf %75, %76 : vector<4x128xf32>
    %78 = math.log %70 : vector<4x128xf32>
    %cst_20 = arith.constant -2.000000e+00 : f32
    %79 = vector.broadcast %cst_20 : f32 to vector<4x128xf32>
    %80 = arith.mulf %79, %78 : vector<4x128xf32>
    %81 = math.sqrt %80 : vector<4x128xf32>
    %cst_21 = arith.constant 6.28318548 : f32
    %82 = vector.broadcast %cst_21 : f32 to vector<4x128xf32>
    %83 = arith.mulf %82, %77 : vector<4x128xf32>
    %84 = math.cos %83 : vector<4x128xf32>
    %85 = arith.mulf %81, %84 : vector<4x128xf32>
    %86 = math.sin %83 : vector<4x128xf32>
    %87 = arith.mulf %81, %86 : vector<4x128xf32>
    %88 = tpu.concatenate %85, %87 in 0 : vector<4x128xf32>, vector<4x128xf32> -> vector<8x128xf32>
    %c0_22 = arith.constant 0 : index
    %89 = memref.load %arg4[%c0_22] : memref<1xf32, #tpu.memory_space<smem>>
    %90 = vector.broadcast %89 : f32 to vector<8x128xf32>
    %91 = arith.mulf %88, %90 : vector<8x128xf32>
    %92 = arith.addf %3, %91 : vector<8x128xf32>
    %c0_23 = arith.constant 0 : index
    %c0_24 = arith.constant 0 : index
    %93 = vector.load %arg5[%c0_23, %c0_24] : memref<8x128xf32, #tpu.memory_space<vmem>>, vector<8x128xf32>
    tpu.vector_store %arg5[%c0_23, %c0_24], %92 {strides = array<i32>} : memref<8x128xf32, #tpu.memory_space<vmem>>, vector<8x128xf32>,
    return
  }
  func.func @transform_0(%arg0: i32, %arg1: memref<1xi32, #tpu.memory_space<smem>>) -> (i32, i32) {
    %c0_i32 = arith.constant 0 : i32
    %c0_i32_0 = arith.constant 0 : i32
    return %arg0, %c0_i32 : i32, i32
  }
  func.func @transform_1(%arg0: i32, %arg1: memref<1xi32, #tpu.memory_space<smem>>) -> (i32, i32) {
    %c0_i32 = arith.constant 0 : i32
    %c0_i32_0 = arith.constant 0 : i32
    %c0_i32_1 = arith.constant 0 : i32
    return %c0_i32, %c0_i32_0 : i32, i32
  }
  func.func @transform_2(%arg0: i32, %arg1: memref<1xi32, #tpu.memory_space<smem>>) -> i32 {
    %c0_i32 = arith.constant 0 : i32
    %c0_i32_0 = arith.constant 0 : i32
    return %c0_i32 : i32
  }
  func.func @transform_3(%arg0: i32, %arg1: memref<1xi32, #tpu.memory_space<smem>>) -> (i32, i32) {
    %c0_i32 = arith.constant 0 : i32
    %c0_i32_0 = arith.constant 0 : i32
    return %arg0, %c0_i32 : i32, i32
  }
}

</mosaic_0001>

<bundles_post_ra>
// kernel: tpu_custom_call.1
= control target key start
LH: loop header
LB: loop body
LE: loop exit
PB: predicated region body
PF: predicated region fallthrough
CT: control target
= control target key end

     0   :  { %11 = vsyncpa [#allocation6], 0  ;;  %s712_s0 = inlined_call_operand.<no memory space> [shape: s32[1], index: 0, kind: input, shape index: {}]   ;;  %s713_s1 = inlined_call_operand.hbm [shape: f32[8,32], index: 1, kind: input, shape index: {}]   ;;  %s714_s2 = inlined_call_operand.hbm [shape: bf16[32,128], index: 2, kind: input, shape index: {}]   ;;  %s715_s3 = inlined_call_operand.<no memory space> [shape: f32[1], index: 3, kind: input, shape index: {}]   ;;  %s716_s4 = inlined_call_operand.hbm [shape: f32[8,128], index: 4, kind: output, shape index: {}]  }
   0x1   :  { %12 = vsyncpa [#allocation9], 0 }
   0x2   :  { %13 = vsyncpa [#allocation7], 0  ;;  %s19_s17 = sshll.u32 %s713_s1, 4  ;;  %s605_s18 = smov [#allocation5]   ;;  %s20_s17 = int_to_ptr.hbm [resolvable:$true] %s19_s17 }
   0x3   :  { %s21_s19 = sshll.u32 %s605_s18, 4  ;;  %s29_s22 = sshll.u32 %s714_s2, 4  ;;  %s22_s19 = int_to_ptr.vmem [resolvable:$true] %s21_s19  ;;  %s30_s22 = int_to_ptr.hbm [resolvable:$true] %s29_s22 }
   0x4   :  { %24 = dma.hbm_to_vmem [thread:$0]  %s20_s17, 128, %s22_s19, [#allocation6]  }
   0x5   :  { %s606_s23 = smov [#allocation8]   ;;  %s607_s25 = smov 64  }
   0x6   :  { %s31_s24 = sshll.u32 %s606_s23, 4  ;;  %s608_s26 = smov 4   ;;  %s32_s24 = int_to_ptr.vmem [resolvable:$true] %s31_s24 }
   0x7   :  { %37 = dma.hbm_to_vmem [thread:$0]  %s30_s22, 256, %s32_s24, [#allocation9], %s607_s25, %s607_s25, %s608_s26  }
   0x8   :  { %599 = dma.done.wait [#allocation6], 128  }
   0x9   :  { %600 = vsyncadd [#allocation6], 4294967168 }
   0xa   :  { %601 = dma.done.wait [#allocation9], 256  }
   0xb   :  { %602 = vsyncadd [#allocation9], 4294967040  ;;  %v57_v0 = vlaneseq  ;;  %s65_s28 = smul.u32 2654435769, %s712_s0  ;;  %v510_v6 = vld [vmem:[#allocation8 + $0x8] sm:$0xff]  ;;  %v509_v8 = vld [vmem:[#allocation8] sm:$0xff] }
   0xc   :  { %460 = vmatpush.bf16.msra.mxu0 %v510_v6  ;;  %v49_v9 = vld [vmem:[#allocation5] sm:$0xff]  ;;  %vm450_vm0 = vcmask 261120   ;;  %v609_v44 = vmov 683565275   ;;  %v610_v46 = vmov 2475754826  }
   0xd   :  { %v58_v1 = vshrl.u32 %v57_v0, 7  ;;  %v62_v2 = vand.u32 127, %v57_v0  ;;  %v66_v4 = vstv %s65_s28  ;;  %v50_v11 = vpack.c.bf16 %v49_v9, %v49_v9  ;;  %s616_s29 = smov [#allocation10]   ;;  %s475_s7 = sshll.u32 %s716_s4, 4  ;;  %s476_s7 = int_to_ptr.hbm [resolvable:$true] %s475_s7 }
   0xe   :  { %v611_v48 = vmov 2131351028   ;;  %v612_v50 = vmov 2102212464   ;;  %v613_v52 = vmov 920167782  }
   0xf   :  { %v63_v3 = vmul.u32 128, %v58_v1  ;;  %v614_v59 = vmov 1326507024   ;;  %s473_s30 = sshll.u32 %s616_s29, 4  ;;  %s474_s30 = int_to_ptr.vmem [resolvable:$true] %s473_s30 }
  0x10   :  { %461 = vmatpush.bf16.msra.mxu0 %v509_v8 }
  0x11   :  { %v64_v5 = vadd.s32 %v63_v3, %v62_v2 }
  0x13   :  { %v67_v7 = vxor.u32 %v66_v4, %v64_v5  ;;  %508 = vmatmul.msk.bf16.vlgmr.msra.gmra.mxu0 %vm450_vm0, %v50_v11 }
  0x15   :  { %v81_v10 = vmul.u32 2246822519, %v67_v7  ;;  %v68_v16 = vmul.u32 2654435761, %v67_v7 }
  0x17   :  { %v82_v12 = vadd.s32 374761393, %v81_v10  ;;  %v69_v19 = vadd.s32 1, %v68_v16 }
  0x19   :  { %v489_v13 = vshrl.u32 %v82_v12, 16  ;;  %v486_v22 = vshrl.u32 %v69_v19, 16 }
  0x1b   :  { %v85_v14 = vxor.u32 %v489_v13, %v82_v12  ;;  %v72_v25 = vxor.u32 %v486_v22, %v69_v19 }
  0x1d   :  { %v86_v15 = vmul.u32 2146121005, %v85_v14  ;;  %v73_v28 = vmul.u32 2146121005, %v72_v25 }
  0x1f   :  { %v490_v17 = vshrl.u32 %v86_v15, 15  ;;  %v487_v31 = vshrl.u32 %v73_v28, 15 }
  0x21   :  { %v89_v18 = vxor.u32 %v490_v17, %v86_v15  ;;  %v76_v35 = vxor.u32 %v487_v31, %v73_v28 }
  0x23   :  { %v90_v20 = vmul.u32 2221713035, %v89_v18  ;;  %v77_v39 = vmul.u32 2221713035, %v76_v35 }
  0x25   :  { %v491_v21 = vshrl.u32 %v90_v20, 16  ;;  %v488_v54 = vshrl.u32 %v77_v39, 16 }
  0x27   :  { %v93_v23 = vxor.u32 %v491_v21, %v90_v20  ;;  %v80_v4 = vxor.u32 %v488_v54, %v77_v39 }
  0x29   :  { %v493_v24 = vshrl.u32 %v93_v23, 8  ;;  %v492_v17 = vshrl.u32 %v80_v4, 8 }
  0x2b   :  { %v101_v26 = vcvt.s32.f32 %v493_v24 }
  0x2d   :  { %v102_v27 = vmul.f32 5.9604645e-08, %v101_v26 }
  0x2f   :  { %v651_v29 = vmul.f32 6.2831855, %v102_v27 }
  0x31   :  { %v122_v30 = vand.u32 2139095040, %v651_v29  ;;  %v119_v33 = vand.u32 2147483647, %v651_v29  ;;  %vm121_vm13 = vcmp.lt.s32.totalorder %v651_v29, 0 }
  0x33   :  { %v123_v32 = vshrl.u32 %v122_v30, 23  ;;  %v126_v37 = vand.u32 8388607, %v119_v33  ;;  %v96_v30 = vcvt.s32.f32 %v492_v17  ;;  %vm120_vm14 = vcmp.le.f32.partialorder %v119_v33, 0.7853982 }
  0x35   :  { %v494_v34 = vadd.s32 4294967169, %v123_v32  ;;  %v127_v41 = vor.u32 8388608, %v126_v37  ;;  %v97_v54 = vadd.f32 1.0, %v96_v30 }
  0x37   :  { %v129_v36 = vadd.s32 1, %v494_v34  ;;  %v660_v61 = vshll.u32 %v127_v41, 8 }
  0x39   :  { %vm130_vm1 = vcmp.gt.s32.totalorder %v129_v36, 0  ;;  %v168_v10 = vand.u32 65535, %v660_v61  ;;  %v169_v11 = vshrl.u32 %v660_v61, 16 }
  0x3a   :  { %v131_v38 = vsel %vm130_vm1, %v129_v36, 0 }
  0x3b   :  { %v133_v40 = vand.u32 31, %v131_v38  ;;  %v657_v42 = vshrl.u32 %v131_v38, 5  ;;  %v615_v38 = vmov 0  }
  0x3d   :  { %v134_v43 = vsub.s32 32, %v133_v40  ;;  %v136_v45 = vshll.u32 %v609_v44, %v133_v40  ;;  %v139_v47 = vshll.u32 %v610_v46, %v133_v40  ;;  %v142_v49 = vshll.u32 %v611_v48, %v133_v40 }
  0x3e   :  { %v145_v51 = vshll.u32 %v612_v50, %v133_v40  ;;  %v148_v53 = vshll.u32 %v613_v52, %v133_v40  ;;  %vm151_vm2 = vcmp.lt.s32.totalorder %v657_v42, 1  ;;  %vm154_vm3 = vcmp.lt.s32.totalorder %v657_v42, 4 }
  0x3f   :  { %v137_v55 = vshrl.u32 %v610_v46, %v134_v43  ;;  %v140_v56 = vshrl.u32 %v611_v48, %v134_v43  ;;  %v143_v57 = vshrl.u32 %v612_v50, %v134_v43  ;;  %v146_v58 = vshrl.u32 %v613_v52, %v134_v43 }
  0x40   :  { %v149_v60 = vshrl.u32 %v614_v59, %v134_v43  ;;  %vm153_vm4 = vcmp.lt.s32.totalorder %v657_v42, 3  ;;  %vm152_vm5 = vcmp.lt.s32.totalorder %v657_v42, 2  ;;  %v135_v19 = vshrl.u32 %v609_v44, %v134_v43 }
  0x41   :  { %v138_v62 = vor.u32 %v137_v55, %v136_v45  ;;  %v141_v63 = vor.u32 %v140_v56, %v139_v47  ;;  %v144_v0 = vor.u32 %v143_v57, %v142_v49  ;;  %v147_v1 = vor.u32 %v146_v58, %v145_v51 }
  0x42   :  { %v150_v2 = vor.u32 %v149_v60, %v148_v53 }
  0x43   :  { %v159_v3 = vsel %vm151_vm2, %v138_v62, %v141_v63  ;;  %v160_v5 = vsel %vm154_vm3, %v147_v1, 920167782  ;;  %v163_v6 = vsel %vm151_vm2, %v141_v63, %v144_v0  ;;  %v155_v34 = vsel %vm151_vm2, %v135_v19, %v138_v62 }
  0x44   :  { %v164_v7 = vsel %vm154_vm3, %v150_v2, 1326507024  ;;  %v161_v8 = vsel %vm153_vm4, %v144_v0, %v160_v5  ;;  %v156_v37 = vsel %vm154_vm3, %v144_v0, 2102212464  ;;  %v98_v62 = vmul.f32 5.9604645e-08, %v97_v54 }
  0x45   :  { %v165_v9 = vsel %vm153_vm4, %v147_v1, %v164_v7  ;;  %v162_v12 = vsel %vm152_vm5, %v159_v3, %v161_v8  ;;  %v157_v48 = vsel %vm153_vm4, %v141_v63, %v156_v37 }
  0x46   :  { %v166_v13 = vsel %vm152_vm5, %v163_v6, %v165_v9  ;;  %v192_v16 = vand.u32 65535, %v162_v12  ;;  %v193_v18 = vshrl.u32 %v162_v12, 16  ;;  %v158_v57 = vsel %vm152_vm5, %v155_v34, %v157_v48 }
  0x47   :  { %v170_v14 = vand.u32 65535, %v166_v13  ;;  %v171_v15 = vshrl.u32 %v166_v13, 16  ;;  %v212_v0 = vmul.u32 %v660_v61, %v158_v57  ;;  %523 = vlog2.f32 %v98_v62 }
  0x48   :  { %v194_v23 = vmul.u32 %v192_v16, %v168_v10  ;;  %v195_v24 = vmul.u32 %v193_v18, %v168_v10  ;;  %v196_v25 = vmul.u32 %v192_v16, %v169_v11  ;;  %v197_v31 = vmul.u32 %v193_v18, %v169_v11 }
  0x49   :  { %v172_v20 = vmul.u32 %v170_v14, %v168_v10  ;;  %v173_v21 = vmul.u32 %v171_v15, %v168_v10  ;;  %v174_v22 = vmul.u32 %v170_v14, %v169_v11  ;;  %v175_v26 = vmul.u32 %v171_v15, %v169_v11 }
  0x4a   :  { %v198_v32 = vshll.u32 %v195_v24, 16  ;;  %v200_v36 = vshll.u32 %v196_v25, 16  ;;  %v199_v46 = vshrl.u32 %v195_v24, 16  ;;  %v201_v52 = vshrl.u32 %v196_v25, 16 }
  0x4b   :  { %v176_v27 = vshll.u32 %v173_v21, 16  ;;  %v178_v28 = vshll.u32 %v174_v22, 16  ;;  %v177_v41 = vshrl.u32 %v173_v21, 16  ;;  %v179_v49 = vshrl.u32 %v174_v22, 16 }
  0x4c   :  { %vm202_vm7 = vc.u32 %v194_v23, %v198_v32  ;;  %v204_v40 = vadd.s32 %v198_v32, %v194_v23 }
  0x4d   :  { %vm180_vm6 = vc.u32 %v172_v20, %v176_v27  ;;  %v182_v35 = vadd.s32 %v176_v27, %v172_v20  ;;  %v203_v44 = vsel %vm202_vm7, 1, %v615_v38  ;;  %v524_v5 = vpop.eup %523  ;;  %vm262_vm7 = vweird.f32 %v651_v29 }
  0x4e   :  { %v181_v39 = vsel %vm180_vm6, 1, %v615_v38  ;;  %v205_v47 = vadd.s32 %v203_v44, %v197_v31  ;;  %vm206_vm9 = vc.u32 %v204_v40, %v200_v36  ;;  %v208_v56 = vadd.s32 %v204_v40, %v200_v36 }
  0x4f   :  { %v183_v43 = vadd.s32 %v181_v39, %v175_v26  ;;  %vm184_vm8 = vc.u32 %v182_v35, %v178_v28  ;;  %v207_v51 = vsel %vm206_vm9, 1, %v615_v38  ;;  %v104_v8 = vmul.f32 0.6931472, %v524_v5 }
  0x50   :  { %v185_v45 = vsel %vm184_vm8, 1, %v615_v38  ;;  %v209_v53 = vadd.s32 %v207_v51, %v205_v47  ;;  %vm433_vm8 = vcmask 1043456  }
  0x51   :  { %v187_v50 = vadd.s32 %v185_v45, %v183_v43  ;;  %v692_v10 = vmul.f32 -2.0, %v104_v8 }
  0x52   :  { %v210_v58 = vadd.s32 %v209_v53, %v199_v46 }
  0x53   :  { %v188_v55 = vadd.s32 %v187_v50, %v177_v41  ;;  %525 = vrsqrt.f32 %v692_v10  ;;  %vm113_vm15 = vcmp.eq.f32.partialorder %v692_v10, inf  ;;  %vm115_vm2 = vcmp.eq.f32.partialorder %v692_v10, 0.0 }
  0x54   :  { %v211_v60 = vadd.s32 %v210_v58, %v201_v52 }
  0x55   :  { %v189_v59 = vadd.s32 %v188_v55, %v179_v49 }
  0x56   :  { %v215_v1 = vadd.s32 1, %v211_v60 }
  0x57   :  { %vm214_vm10 = vc.u32 %v189_v59, %v208_v56  ;;  %v213_v61 = vadd.s32 %v208_v56, %v189_v59  ;;  %v116_v56 = vand.u32 2147483648, %v692_v10 }
  0x58   :  { %v216_v63 = vsel %vm214_vm10, %v215_v1, %v211_v60 }
  0x59   :  { %v217_v2 = vadd.s32 %v216_v63, %v212_v0  ;;  %v526_v19 = vpop.eup %525 }
  0x5a   :  { %v107_v24 = vmul.f32 %v526_v19, %v692_v10 }
  0x5b   :  { %v218_v3 = vadd.s32 536870912, %v217_v2 }
  0x5c   :  { %v108_v27 = vmul.f32 %v526_v19, %v107_v24 }
  0x5d   :  { %v219_v4 = vshrl.u32 %v218_v3, 30 }
  0x5e   :  { %v109_v32 = vmul.f32 0.5, %v108_v27 }
  0x5f   :  { %v220_v6 = vshll.u32 %v219_v4, 30  ;;  %v243_v28 = vsub.s32 4, %v219_v4 }
  0x60   :  { %v110_v40 = vsub.f32 1.5, %v109_v32 }
  0x61   :  { %v221_v7 = vsub.s32 %v217_v2, %v220_v6  ;;  %v244_v34 = vsel %vm121_vm13, %v243_v28, %v219_v4 }
  0x62   :  { %v246_v37 = vsel %vm120_vm14, 0, %v244_v34  ;;  %v111_v47 = vmul.f32 %v526_v19, %v110_v40 }
  0x63   :  { %vm222_vm11 = vcmp.lt.s32.totalorder %v221_v7, 0  ;;  %v223_v42 = vsub.s32 0, %v221_v7  ;;  %v418_v44 = vadd.s32 3, %v246_v37  ;;  %v263_v33 = vand.u32 3, %v246_v37 }
  0x64   :  { %v112_v53 = vmul.f32 %v111_v47, %v692_v10 }
  0x65   :  { %v224_v9 = vsel %vm222_vm11, %v223_v42, %v221_v7  ;;  %v419_v50 = vand.u32 3, %v418_v44  ;;  %vm268_vm0 = vcmp.eq.s32.totalorder %v263_v33, 2  ;;  %vm264_vm3 = vcmp.lt.s32.totalorder %v263_v33, 2 }
  0x66   :  { %v225_v11 = vclz %v224_v9  ;;  %v114_v59 = vsel %vm113_vm15, %v692_v10, %v112_v53  ;;  %vm265_vm4 = vcmp.eq.s32.totalorder %v263_v33, 0  ;;  %v436_v9 = vstv %s715_s3 }
  0x67   :  { %vm424_vm1 = vcmp.eq.s32.totalorder %v419_v50, 2  ;;  %vm421_vm5 = vcmp.eq.s32.totalorder %v419_v50, 0  ;;  %vm420_vm6 = vcmp.lt.s32.totalorder %v419_v50, 2  ;;  %v117_v1 = vsel %vm115_vm2, %v116_v56, %v114_v59 }
  0x68   :  { %v495_v12 = vadd.s32 4294967294, %v225_v11 }
  0x6a   :  { %vm496_vm12 = vcmp.lt.s32.totalorder %v495_v12, 0 }
  0x6b   :  { %v228_v13 = vsel %vm496_vm12, 0, %v495_v12 }
  0x6c   :  { %v229_v14 = vsub.s32 32, %v228_v13  ;;  %v230_v15 = vshll.u32 %v221_v7, %v228_v13  ;;  %v233_v16 = vsub.s32 4294967266, %v228_v13 }
  0x6e   :  { %v231_v17 = vshrl.u32 %v213_v61, %v229_v14  ;;  %v234_v18 = vadd.s32 127, %v233_v16 }
  0x70   :  { %v232_v20 = vor.u32 %v231_v17, %v230_v15  ;;  %v235_v21 = vshll.u32 %v234_v18, 23 }
  0x72   :  { %v236_v22 = vor.u32 4788187, %v235_v21  ;;  %v239_v23 = vcvt.s32.f32 %v232_v20 }
  0x74   :  { %v237_v25 = vand.u32 2147483647, %v236_v22 }
  0x76   :  { %v240_v26 = vmul.f32 %v239_v23, %v237_v25 }
  0x78   :  { %v241_v30 = vxor.u32 2147483648, %v240_v26 }
  0x7a   :  { %v242_v31 = vsel %vm121_vm13, %v241_v30, %v240_v26 }
  0x7b   :  { %v245_v35 = vsel %vm120_vm14, %v651_v29, %v242_v31 }
  0x7c   :  { %v247_v36 = vmul.f32 %v245_v35, %v245_v35 }
  0x7e   :  { %v248_v38 = vmul.f32 -0.001358992, %v247_v36  ;;  %v255_v39 = vmul.f32 -0.00019511016, %v247_v36 }
  0x80   :  { %v249_v41 = vadd.f32 0.041655596, %v248_v38  ;;  %v256_v43 = vadd.f32 0.008332121, %v255_v39 }
  0x82   :  { %v250_v45 = vmul.f32 %v249_v41, %v247_v36  ;;  %v257_v46 = vmul.f32 %v256_v43, %v247_v36 }
  0x84   :  { %v251_v48 = vadd.f32 -0.4999988, %v250_v45  ;;  %v258_v49 = vadd.f32 -0.16666654, %v257_v46 }
  0x86   :  { %v252_v51 = vmul.f32 %v251_v48, %v247_v36  ;;  %v259_v52 = vmul.f32 %v258_v49, %v247_v36 }
  0x88   :  { %v253_v54 = vadd.f32 1.0, %v252_v51  ;;  %v260_v55 = vadd.f32 1.0, %v259_v52 }
  0x8a   :  { %v261_v57 = vmul.f32 %v260_v55, %v245_v35  ;;  %v269_v58 = vxor.u32 2147483648, %v253_v54 }
  0x8c   :  { %v266_v60 = vxor.u32 2147483648, %v261_v57  ;;  %v270_v62 = vsel %vm268_vm0, %v269_v58, %v261_v57  ;;  %v426_v0 = vsel %vm424_vm1, %v269_v58, %v261_v57 }
  0x8e   :  { %v267_v63 = vsel %vm265_vm4, %v253_v54, %v266_v60  ;;  %v423_v2 = vsel %vm421_vm5, %v253_v54, %v266_v60 }
  0x8f   :  { %v271_v3 = vsel %vm264_vm3, %v267_v63, %v270_v62  ;;  %v427_v4 = vsel %vm420_vm6, %v423_v2, %v426_v0 }
  0x90   :  { %v272_v5 = vsel %vm262_vm7, nan, %v271_v3  ;;  %v428_v6 = vsel %vm262_vm7, nan, %v427_v4  ;;  %v463_v11 = vpop.f32.mrf.mxu0 }
  0x91   :  { %v273_v7 = vmul.f32 %v272_v5, %v117_v1  ;;  %v429_v8 = vmul.f32 %v428_v6, %v117_v1 }
  0x93   :  { %v431_v42 = vrot.slane %v429_v8, 4 }
  0x95   :  { %v434_v10 = vsel %vm433_vm8, %v273_v7, %v431_v42 }
  0x96   :  { %v437_v29 = vmul.f32 %v436_v9, %v434_v10 }
  0x98   :  { %v464_v12 = vadd.f32 %v463_v11, %v437_v29  ;;  %v465_v61 = vpop.f32.mrf.mxu0 }
  0x9a   :  { %467 = vst [vmem:[#allocation10] sm:$0xff] %v464_v12 }
  0x9b   :  { %478 = dma.vmem_to_hbm [thread:$0]  %s474_s30, 128, %s476_s7, [#allocation7]  }
  0x9c   :  { %603 = dma.done.wait [#allocation7], 128  }
  0x9d   :  { %604 = vsyncadd [#allocation7], 4294967168 }
  0x9e   :  { %483 = vsyncpa [#allocation6], 1 }
  0x9f   :  { %484 = vsyncpa [#allocation9], 1 }
  0xa0   :  { %485 = vsyncpa [#allocation7], 1 }

</bundles_post_ra>
